<compile_context>
chip_gen: v7x
topology: tpu7x:2x2x1
jax: 0.10.0
libtpu: 0.0.40
codegen_flags: <defaults>
</compile_context>

<pallas_src>
import math
import functools

import jax
import jax.numpy as jnp
from jax.experimental import pallas as pl
from jax.experimental.pallas import tpu as pltpu


def cross_attn_kernel(m1_ref, m2_ref,
                      wq_ref, bq_ref, wk_ref, bk_ref, wv_ref, bv_ref,
                      wo_ref, bo_ref,
                      o_ref, *, heads, seq_len):
    """One batch-tile per grid step.

    m1_ref/m2_ref/o_ref: (batch_tile*L, E) batch-major rows (row = b*L + l).
    wq/wk/wv: fused (module Linear ∘ MHA in_proj) weights, PRE-transposed, q pre-scaled.
    wo: MHA out_proj weight, PRE-transposed. Biases are (1, E), kept in f32.
    """
    f32 = jnp.float32
    M, E = m1_ref.shape                 # M = batch_tile * L
    L = seq_len
    Bt = M // L
    hd = E // heads
    cdt = m1_ref.dtype                  # compute dtype for MXU inputs (f32 or bf16)

    x1 = m1_ref[...]                    # (M, E)
    x2 = m2_ref[...]

    # ---- fused projections: single GEMM each, M = batch_tile*L, f32 accumulation ----
    q = (jnp.dot(x1, wq_ref[...], preferred_element_type=f32) + bq_ref[...]).astype(cdt)
    k = (jnp.dot(x1, wk_ref[...], preferred_element_type=f32) + bk_ref[...]).astype(cdt)
    v = (jnp.dot(x2, wv_ref[...], preferred_element_type=f32) + bv_ref[...]).astype(cdt)

    # Split rows back into (batch, seq). L is a multiple of 8 at the shipped shapes, so these
    # reshapes are layout-preserving (sublane-aligned merge/split).
    q3 = q.reshape(Bt, L, E)
    k3 = k.reshape(Bt, L, E)
    v3 = v.reshape(Bt, L, E)

    wo = wo_ref[...]                    # (E, E), already transposed

    # ---- per-head attention, accumulated directly into the out-projection (no concat) ----
    acc = jnp.zeros((M, E), f32)
    for h in range(heads):
        lo, hi = h * hd, (h + 1) * hd
        qh = q3[:, :, lo:hi]            # (Bt, L, hd)   (scale already folded into wq)
        kh = k3[:, :, lo:hi]
        vh = v3[:, :, lo:hi]

        s = jnp.einsum('bld,bmd->blm', qh, kh, preferred_element_type=f32)   # (Bt, L, L)
        s = s - jnp.max(s, axis=-1, keepdims=True)
        p = jnp.exp(s)
        p = p * pl.reciprocal(jnp.sum(p, axis=-1, keepdims=True), approx=True)  # EUP, not VALU

        ctx = jnp.einsum('blm,bmd->bld', p.astype(cdt), vh,
                         preferred_element_type=f32)                         # (Bt, L, hd)
        # out_proj contribution of this head: ctx_h @ WtO[h*hd:(h+1)*hd, :]
        acc = acc + jnp.dot(ctx.reshape(M, hd).astype(cdt), wo[lo:hi, :],
                            preferred_element_type=f32)

    o_ref[...] = (acc + bo_ref[...]).astype(o_ref.dtype)


def _fuse_params(params, heads, compute_dtype):
    """Fold (module Linear -> MHA in_proj) into one effective projection per q/k/v,
    pre-transpose all weights, and fold the 1/sqrt(hd) scale into q."""
    E = params["key_w"].shape[0]
    hd = E // heads
    scale = 1.0 / math.sqrt(hd)

    inw = params["in_proj_w"]                      # (3E, E): rows [q | k | v]
    inb = params["in_proj_b"]                      # (3E,)
    wq_in, wk_in, wv_in = inw[:E], inw[E:2 * E], inw[2 * E:]
    bq_in, bk_in, bv_in = inb[:E], inb[E:2 * E], inb[2 * E:]

    # NOTE: the module feeds _to_key(m1) as the MHA *query* and _to_query(m1) as the MHA *key*.
    # This mirrors the original forward (attn(m1_k, m1_v, m2_q)) and is intentional.
    wt_q = ((wq_in @ params["key_w"]).T * scale).astype(compute_dtype)      # (E, E) pre-T, pre-scaled
    b_q = ((wq_in @ params["key_b"] + bq_in) * scale).reshape(1, E).astype(jnp.float32)
    wt_k = (wk_in @ params["query_w"]).T.astype(compute_dtype)
    b_k = (wk_in @ params["query_b"] + bk_in).reshape(1, E).astype(jnp.float32)
    wt_v = (wv_in @ params["value_w"]).T.astype(compute_dtype)
    b_v = (wv_in @ params["value_b"] + bv_in).reshape(1, E).astype(jnp.float32)
    wt_o = params["out_w"].T.astype(compute_dtype)
    b_o = params["out_b"].reshape(1, E).astype(jnp.float32)
    return wt_q, b_q, wt_k, b_k, wt_v, b_v, wt_o, b_o


def cross_attn_block_forward(m1_x, m2_x, params, heads, *,
                             batch_tile=None, compute_dtype=jnp.float32):
    """m1_x, m2_x: (L, N, E) seq-first (same convention as the PyTorch module).

    compute_dtype: jnp.float32 (default, v5e-safe) or jnp.bfloat16 (recommended on v6e/v7x);
    accumulation is always f32.
    """
    L, N, E = m1_x.shape
    assert E % heads == 0
    if batch_tile is None:
        batch_tile = N                  # whole batch in one grid step at small N
    assert N % batch_tile == 0

    wt_q, b_q, wt_k, b_k, wt_v, b_v, wt_o, b_o = _fuse_params(params, heads, compute_dtype)

    # Batch-major, flattened to (N*L, E) so batch*seq becomes the matmul M dimension.
    m1_b = jnp.transpose(m1_x, (1, 0, 2)).reshape(N * L, E).astype(compute_dtype)
    m2_b = jnp.transpose(m2_x, (1, 0, 2)).reshape(N * L, E).astype(compute_dtype)

    rows = batch_tile * L
    kernel = functools.partial(cross_attn_kernel, heads=heads, seq_len=L)

    def act_spec():
        return pl.BlockSpec((rows, E), lambda b: (b, 0))

    def full2d(shape):
        # weights/biases: single resident block, constant index map -> not re-fetched per step
        return pl.BlockSpec(shape, lambda b: (0, 0))

    out = pl.pallas_call(
        kernel,
        out_shape=jax.ShapeDtypeStruct((N * L, E), jnp.float32),
        grid=(N // batch_tile,),
        in_specs=[
            act_spec(),                       # m1 (batch-major rows)
            act_spec(),                       # m2
            full2d((E, E)), full2d((1, E)),   # fused q (scale folded in)
            full2d((E, E)), full2d((1, E)),   # fused k
            full2d((E, E)), full2d((1, E)),   # fused v
            full2d((E, E)), full2d((1, E)),   # out_proj (pre-transposed)
        ],
        out_specs=act_spec(),
        compiler_params=pltpu.CompilerParams(
            dimension_semantics=("parallel",),          # batch tiles are independent
            vmem_limit_bytes=32 * 1024 * 1024),
    )(m1_b, m2_b, wt_q, b_q, wt_k, b_k, wt_v, b_v, wt_o, b_o)

    # back to the module's seq-first (L, N, E) layout
    return jnp.transpose(out.reshape(N, L, E), (1, 0, 2)).astype(m1_x.dtype)


def cross_attn_block_reference(m1_x, m2_x, params, heads):
    """Pure-JAX (unfused) reference of the same math, for correctness checking."""
    L, N, E = m1_x.shape
    hd = E // heads
    lin = lambda x, w, b: jnp.einsum("lne,fe->lnf", x, w) + b
    q_in = lin(m1_x, params["key_w"], params["key_b"])
    k_in = lin(m1_x, params["query_w"], params["query_b"])
    v_in = lin(m2_x, params["value_w"], params["value_b"])
    inw, inb = params["in_proj_w"], params["in_proj_b"]
    q = lin(q_in, inw[:E], inb[:E])
    k = lin(k_in, inw[E:2 * E], inb[E:2 * E])
    v = lin(v_in, inw[2 * E:], inb[2 * E:])
    qh = q.reshape(L, N, heads, hd).transpose(1, 2, 0, 3)   # (N, H, L, hd)
    kh = k.reshape(L, N, heads, hd).transpose(1, 2, 0, 3)
    vh = v.reshape(L, N, heads, hd).transpose(1, 2, 0, 3)
    s = jnp.einsum("nhld,nhmd->nhlm", qh, kh) / math.sqrt(hd)
    p = jax.nn.softmax(s, axis=-1)
    ctx = jnp.einsum("nhlm,nhmd->nhld", p, vh)
    ctx = ctx.transpose(2, 0, 1, 3).reshape(L, N, E)
    return jnp.einsum("lne,fe->lnf", ctx, params["out_w"]) + params["out_b"]


if __name__ == "__main__":
    # Small shapes consistent with the module: seq=8, batch=2, dim=32, heads=4, dropout=0.0
    L, N, E, H = 8, 2, 32, 4
    key = jax.random.PRNGKey(0)
    ks = jax.random.split(key, 12)

    def init(k, shape, scale=0.1):
        return (scale * jax.random.normal(k, shape)).astype(jnp.float32)

    params = {
        "key_w": init(ks[0], (E, E)),   "key_b": init(ks[1], (E,)),
        "query_w": init(ks[2], (E, E)), "query_b": init(ks[3], (E,)),
        "value_w": init(ks[4], (E, E)), "value_b": init(ks[5], (E,)),
        "in_proj_w": init(ks[6], (3 * E, E)), "in_proj_b": init(ks[7], (3 * E,)),
        "out_w": init(ks[8], (E, E)),   "out_b": init(ks[9], (E,)),
    }
    # TODO(synk): PositionalEncoding path (add_positional=True) not implemented — class not defined
    # in the provided module source; default add_positional=False is what is reproduced here.

    m1_x = jax.random.normal(ks[10], (L, N, E), dtype=jnp.float32)
    m2_x = jax.random.normal(ks[11], (L, N, E), dtype=jnp.float32)

    ref = cross_attn_block_reference(m1_x, m2_x, params, heads=H)

    # f32 compute path (safe on all chips). Tolerance slightly loosened because the softmax
    # denominator uses the EUP approximate reciprocal.
    out_f32 = jax.block_until_ready(cross_attn_block_forward(m1_x, m2_x, params, heads=H))
    assert out_f32.shape == (L, N, E)
    assert jnp.allclose(out_f32, ref, atol=5e-3, rtol=5e-3), "f32 kernel mismatch vs reference"

    # bf16 compute path (v6e/v7x MXU rate + halved DMA bytes), f32 accumulation.
    out_bf16 = jax.block_until_ready(
        cross_attn_block_forward(m1_x, m2_x, params, heads=H, compute_dtype=jnp.bfloat16))
    assert jnp.allclose(out_bf16, ref, atol=5e-2, rtol=5e-2), "bf16 kernel mismatch vs reference"

    print("KERNEL_OK")
</pallas_src>

<mosaic_0001>
module attributes {stable_mosaic.version = 11 : i64} {
  func.func @cross_attn_kernel(%arg0: i32, %arg1: memref<16x32xf32, #tpu.memory_space<vmem>>, %arg2: memref<16x32xf32, #tpu.memory_space<vmem>>, %arg3: memref<32x32xf32, #tpu.memory_space<vmem>>, %arg4: memref<1x32xf32, #tpu.memory_space<vmem>>, %arg5: memref<32x32xf32, #tpu.memory_space<vmem>>, %arg6: memref<1x32xf32, #tpu.memory_space<vmem>>, %arg7: memref<32x32xf32, #tpu.memory_space<vmem>>, %arg8: memref<1x32xf32, #tpu.memory_space<vmem>>, %arg9: memref<32x32xf32, #tpu.memory_space<vmem>>, %arg10: memref<1x32xf32, #tpu.memory_space<vmem>>, %arg11: memref<16x32xf32, #tpu.memory_space<vmem>>) attributes {dimension_semantics = [#tpu.dimension_semantics<parallel>], iteration_bounds = array<i64: 1>, scalar_prefetch = 0 : i64, scratch_operands = 0 : i64, tpu.core_type = #tpu.core_type<tc>, window_params = [{transform_indices = @transform_0, window_bounds = array<i64: 16, 32>}, {transform_indices = @transform_1, window_bounds = array<i64: 16, 32>}, {pipeline_mode = #tpu.pipeline_mode<synchronous>, transform_indices = @transform_2, window_bounds = array<i64: 32, 32>}, {pipeline_mode = #tpu.pipeline_mode<synchronous>, transform_indices = @transform_3, window_bounds = array<i64: 1, 32>}, {pipeline_mode = #tpu.pipeline_mode<synchronous>, transform_indices = @transform_4, window_bounds = array<i64: 32, 32>}, {pipeline_mode = #tpu.pipeline_mode<synchronous>, transform_indices = @transform_5, window_bounds = array<i64: 1, 32>}, {pipeline_mode = #tpu.pipeline_mode<synchronous>, transform_indices = @transform_6, window_bounds = array<i64: 32, 32>}, {pipeline_mode = #tpu.pipeline_mode<synchronous>, transform_indices = @transform_7, window_bounds = array<i64: 1, 32>}, {pipeline_mode = #tpu.pipeline_mode<synchronous>, transform_indices = @transform_8, window_bounds = array<i64: 32, 32>}, {pipeline_mode = #tpu.pipeline_mode<synchronous>, transform_indices = @transform_9, window_bounds = array<i64: 1, 32>}, {transform_indices = @transform_10, window_bounds = array<i64: 16, 32>}]} {
    %c0 = arith.constant 0 : index
    %c0_0 = arith.constant 0 : index
    %0 = vector.load %arg1[%c0, %c0_0] : memref<16x32xf32, #tpu.memory_space<vmem>>, vector<16x32xf32>
    %c0_1 = arith.constant 0 : index
    %c0_2 = arith.constant 0 : index
    %1 = vector.load %arg2[%c0_1, %c0_2] : memref<16x32xf32, #tpu.memory_space<vmem>>, vector<16x32xf32>
    %c0_3 = arith.constant 0 : index
    %c0_4 = arith.constant 0 : index
    %2 = vector.load %arg3[%c0_3, %c0_4] : memref<32x32xf32, #tpu.memory_space<vmem>>, vector<32x32xf32>
    %cst = arith.constant dense<0.000000e+00> : vector<16x32xf32>
    %3 = tpu.matmul %0, %2, %cst {dimension_numbers = #tpu.dot_dimension_numbers<[1], [0], [0], [1], [0, 0, 1, 1], [], []>} : vector<16x32xf32>, vector<32x32xf32>, vector<16x32xf32> -> vector<16x32xf32>
    %c0_5 = arith.constant 0 : index
    %c0_6 = arith.constant 0 : index
    %4 = vector.load %arg4[%c0_5, %c0_6] : memref<1x32xf32, #tpu.memory_space<vmem>>, vector<1x32xf32>
    %5 = vector.broadcast %4 : vector<1x32xf32> to vector<16x32xf32>
    %6 = arith.addf %3, %5 : vector<16x32xf32>
    %c0_7 = arith.constant 0 : index
    %c0_8 = arith.constant 0 : index
    %7 = vector.load %arg5[%c0_7, %c0_8] : memref<32x32xf32, #tpu.memory_space<vmem>>, vector<32x32xf32>
    %cst_9 = arith.constant dense<0.000000e+00> : vector<16x32xf32>
    %8 = tpu.matmul %0, %7, %cst_9 {dimension_numbers = #tpu.dot_dimension_numbers<[1], [0], [0], [1], [0, 0, 1, 1], [], []>} : vector<16x32xf32>, vector<32x32xf32>, vector<16x32xf32> -> vector<16x32xf32>
    %c0_10 = arith.constant 0 : index
    %c0_11 = arith.constant 0 : index
    %9 = vector.load %arg6[%c0_10, %c0_11] : memref<1x32xf32, #tpu.memory_space<vmem>>, vector<1x32xf32>
    %10 = vector.broadcast %9 : vector<1x32xf32> to vector<16x32xf32>
    %11 = arith.addf %8, %10 : vector<16x32xf32>
    %c0_12 = arith.constant 0 : index
    %c0_13 = arith.constant 0 : index
    %12 = vector.load %arg7[%c0_12, %c0_13] : memref<32x32xf32, #tpu.memory_space<vmem>>, vector<32x32xf32>
    %cst_14 = arith.constant dense<0.000000e+00> : vector<16x32xf32>
    %13 = tpu.matmul %1, %12, %cst_14 {dimension_numbers = #tpu.dot_dimension_numbers<[1], [0], [0], [1], [0, 0, 1, 1], [], []>} : vector<16x32xf32>, vector<32x32xf32>, vector<16x32xf32> -> vector<16x32xf32>
    %c0_15 = arith.constant 0 : index
    %c0_16 = arith.constant 0 : index
    %14 = vector.load %arg8[%c0_15, %c0_16] : memref<1x32xf32, #tpu.memory_space<vmem>>, vector<1x32xf32>
    %15 = vector.broadcast %14 : vector<1x32xf32> to vector<16x32xf32>
    %16 = arith.addf %13, %15 : vector<16x32xf32>
    %17 = vector.shape_cast %6 : vector<16x32xf32> to vector<2x8x32xf32>
    %18 = vector.shape_cast %11 : vector<16x32xf32> to vector<2x8x32xf32>
    %19 = vector.shape_cast %16 : vector<16x32xf32> to vector<2x8x32xf32>
    %c0_17 = arith.constant 0 : index
    %c0_18 = arith.constant 0 : index
    %20 = vector.load %arg9[%c0_17, %c0_18] : memref<32x32xf32, #tpu.memory_space<vmem>>, vector<32x32xf32>
    %cst_19 = arith.constant 0.000000e+00 : f32
    %21 = vector.broadcast %cst_19 : f32 to vector<16x32xf32>
    %22 = vector.extract_strided_slice %17 {offsets = [0, 0, 0], sizes = [2, 8, 8], strides = [1, 1, 1]} : vector<2x8x32xf32> to vector<2x8x8xf32>
    %23 = vector.extract_strided_slice %18 {offsets = [0, 0, 0], sizes = [2, 8, 8], strides = [1, 1, 1]} : vector<2x8x32xf32> to vector<2x8x8xf32>
    %24 = vector.extract_strided_slice %19 {offsets = [0, 0, 0], sizes = [2, 8, 8], strides = [1, 1, 1]} : vector<2x8x32xf32> to vector<2x8x8xf32>
    "tpu.trace_start"() <{level = 10 : i32, message = "bld,bmd->blm"}> : () -> ()
    %cst_20 = arith.constant dense<0.000000e+00> : vector<2x8x8xf32>
    %25 = tpu.matmul %22, %23, %cst_20 {dimension_numbers = #tpu.dot_dimension_numbers<[2], [2], [1], [1], [0, 0, 0, 1, 1, 1], [0], [0]>} : vector<2x8x8xf32>, vector<2x8x8xf32>, vector<2x8x8xf32> -> vector<2x8x8xf32>
    "tpu.trace_stop"() : () -> ()
    %cst_21 = arith.constant dense<0xFF800000> : vector<2x8xf32>
    %26 = vector.multi_reduction <maximumf>, %25, %cst_21 [2] : vector<2x8x8xf32> to vector<2x8xf32>
    %27 = vector.shape_cast %26 : vector<2x8xf32> to vector<2x8x1xf32>
    %28 = vector.broadcast %27 : vector<2x8x1xf32> to vector<2x8x8xf32>
    %29 = arith.subf %25, %28 : vector<2x8x8xf32>
    %30 = math.exp %29 : vector<2x8x8xf32>
    %cst_22 = arith.constant dense<0.000000e+00> : vector<2x8xf32>
    %31 = vector.multi_reduction <add>, %30, %cst_22 [2] : vector<2x8x8xf32> to vector<2x8xf32>
    %32 = vector.shape_cast %31 : vector<2x8xf32> to vector<2x8x1xf32>
    %33 = tpu.reciprocal %32 {approx = true} : vector<2x8x1xf32> -> vector<2x8x1xf32>
    %34 = vector.broadcast %33 : vector<2x8x1xf32> to vector<2x8x8xf32>
    %35 = arith.mulf %30, %34 : vector<2x8x8xf32>
    "tpu.trace_start"() <{level = 10 : i32, message = "blm,bmd->bld"}> : () -> ()
    %cst_23 = arith.constant dense<0.000000e+00> : vector<2x8x8xf32>
    %36 = tpu.matmul %35, %24, %cst_23 {dimension_numbers = #tpu.dot_dimension_numbers<[2], [1], [1], [2], [0, 0, 0, 1, 1, 2], [0], [0]>} : vector<2x8x8xf32>, vector<2x8x8xf32>, vector<2x8x8xf32> -> vector<2x8x8xf32>
    "tpu.trace_stop"() : () -> ()
    %37 = vector.shape_cast %36 : vector<2x8x8xf32> to vector<16x8xf32>
    %38 = vector.extract_strided_slice %20 {offsets = [0, 0], sizes = [8, 32], strides = [1, 1]} : vector<32x32xf32> to vector<8x32xf32>
    %cst_24 = arith.constant dense<0.000000e+00> : vector<16x32xf32>
    %39 = tpu.matmul %37, %38, %cst_24 {dimension_numbers = #tpu.dot_dimension_numbers<[1], [0], [0], [1], [0, 0, 1, 1], [], []>} : vector<16x8xf32>, vector<8x32xf32>, vector<16x32xf32> -> vector<16x32xf32>
    %40 = arith.addf %21, %39 : vector<16x32xf32>
    %41 = vector.extract_strided_slice %17 {offsets = [0, 0, 8], sizes = [2, 8, 8], strides = [1, 1, 1]} : vector<2x8x32xf32> to vector<2x8x8xf32>
    %42 = vector.extract_strided_slice %18 {offsets = [0, 0, 8], sizes = [2, 8, 8], strides = [1, 1, 1]} : vector<2x8x32xf32> to vector<2x8x8xf32>
    %43 = vector.extract_strided_slice %19 {offsets = [0, 0, 8], sizes = [2, 8, 8], strides = [1, 1, 1]} : vector<2x8x32xf32> to vector<2x8x8xf32>
    "tpu.trace_start"() <{level = 10 : i32, message = "bld,bmd->blm"}> : () -> ()
    %cst_25 = arith.constant dense<0.000000e+00> : vector<2x8x8xf32>
    %44 = tpu.matmul %41, %42, %cst_25 {dimension_numbers = #tpu.dot_dimension_numbers<[2], [2], [1], [1], [0, 0, 0, 1, 1, 1], [0], [0]>} : vector<2x8x8xf32>, vector<2x8x8xf32>, vector<2x8x8xf32> -> vector<2x8x8xf32>
    "tpu.trace_stop"() : () -> ()
    %cst_26 = arith.constant dense<0xFF800000> : vector<2x8xf32>
    %45 = vector.multi_reduction <maximumf>, %44, %cst_26 [2] : vector<2x8x8xf32> to vector<2x8xf32>
    %46 = vector.shape_cast %45 : vector<2x8xf32> to vector<2x8x1xf32>
    %47 = vector.broadcast %46 : vector<2x8x1xf32> to vector<2x8x8xf32>
    %48 = arith.subf %44, %47 : vector<2x8x8xf32>
    %49 = math.exp %48 : vector<2x8x8xf32>
    %cst_27 = arith.constant dense<0.000000e+00> : vector<2x8xf32>
    %50 = vector.multi_reduction <add>, %49, %cst_27 [2] : vector<2x8x8xf32> to vector<2x8xf32>
    %51 = vector.shape_cast %50 : vector<2x8xf32> to vector<2x8x1xf32>
    %52 = tpu.reciprocal %51 {approx = true} : vector<2x8x1xf32> -> vector<2x8x1xf32>
    %53 = vector.broadcast %52 : vector<2x8x1xf32> to vector<2x8x8xf32>
    %54 = arith.mulf %49, %53 : vector<2x8x8xf32>
    "tpu.trace_start"() <{level = 10 : i32, message = "blm,bmd->bld"}> : () -> ()
    %cst_28 = arith.constant dense<0.000000e+00> : vector<2x8x8xf32>
    %55 = tpu.matmul %54, %43, %cst_28 {dimension_numbers = #tpu.dot_dimension_numbers<[2], [1], [1], [2], [0, 0, 0, 1, 1, 2], [0], [0]>} : vector<2x8x8xf32>, vector<2x8x8xf32>, vector<2x8x8xf32> -> vector<2x8x8xf32>
    "tpu.trace_stop"() : () -> ()
    %56 = vector.shape_cast %55 : vector<2x8x8xf32> to vector<16x8xf32>
    %57 = vector.extract_strided_slice %20 {offsets = [8, 0], sizes = [8, 32], strides = [1, 1]} : vector<32x32xf32> to vector<8x32xf32>
    %cst_29 = arith.constant dense<0.000000e+00> : vector<16x32xf32>
    %58 = tpu.matmul %56, %57, %cst_29 {dimension_numbers = #tpu.dot_dimension_numbers<[1], [0], [0], [1], [0, 0, 1, 1], [], []>} : vector<16x8xf32>, vector<8x32xf32>, vector<16x32xf32> -> vector<16x32xf32>
    %59 = arith.addf %40, %58 : vector<16x32xf32>
    %60 = vector.extract_strided_slice %17 {offsets = [0, 0, 16], sizes = [2, 8, 8], strides = [1, 1, 1]} : vector<2x8x32xf32> to vector<2x8x8xf32>
    %61 = vector.extract_strided_slice %18 {offsets = [0, 0, 16], sizes = [2, 8, 8], strides = [1, 1, 1]} : vector<2x8x32xf32> to vector<2x8x8xf32>
    %62 = vector.extract_strided_slice %19 {offsets = [0, 0, 16], sizes = [2, 8, 8], strides = [1, 1, 1]} : vector<2x8x32xf32> to vector<2x8x8xf32>
    "tpu.trace_start"() <{level = 10 : i32, message = "bld,bmd->blm"}> : () -> ()
    %cst_30 = arith.constant dense<0.000000e+00> : vector<2x8x8xf32>
    %63 = tpu.matmul %60, %61, %cst_30 {dimension_numbers = #tpu.dot_dimension_numbers<[2], [2], [1], [1], [0, 0, 0, 1, 1, 1], [0], [0]>} : vector<2x8x8xf32>, vector<2x8x8xf32>, vector<2x8x8xf32> -> vector<2x8x8xf32>
    "tpu.trace_stop"() : () -> ()
    %cst_31 = arith.constant dense<0xFF800000> : vector<2x8xf32>
    %64 = vector.multi_reduction <maximumf>, %63, %cst_31 [2] : vector<2x8x8xf32> to vector<2x8xf32>
    %65 = vector.shape_cast %64 : vector<2x8xf32> to vector<2x8x1xf32>
    %66 = vector.broadcast %65 : vector<2x8x1xf32> to vector<2x8x8xf32>
    %67 = arith.subf %63, %66 : vector<2x8x8xf32>
    %68 = math.exp %67 : vector<2x8x8xf32>
    %cst_32 = arith.constant dense<0.000000e+00> : vector<2x8xf32>
    %69 = vector.multi_reduction <add>, %68, %cst_32 [2] : vector<2x8x8xf32> to vector<2x8xf32>
    %70 = vector.shape_cast %69 : vector<2x8xf32> to vector<2x8x1xf32>
    %71 = tpu.reciprocal %70 {approx = true} : vector<2x8x1xf32> -> vector<2x8x1xf32>
    %72 = vector.broadcast %71 : vector<2x8x1xf32> to vector<2x8x8xf32>
    %73 = arith.mulf %68, %72 : vector<2x8x8xf32>
    "tpu.trace_start"() <{level = 10 : i32, message = "blm,bmd->bld"}> : () -> ()
    %cst_33 = arith.constant dense<0.000000e+00> : vector<2x8x8xf32>
    %74 = tpu.matmul %73, %62, %cst_33 {dimension_numbers = #tpu.dot_dimension_numbers<[2], [1], [1], [2], [0, 0, 0, 1, 1, 2], [0], [0]>} : vector<2x8x8xf32>, vector<2x8x8xf32>, vector<2x8x8xf32> -> vector<2x8x8xf32>
    "tpu.trace_stop"() : () -> ()
    %75 = vector.shape_cast %74 : vector<2x8x8xf32> to vector<16x8xf32>
    %76 = vector.extract_strided_slice %20 {offsets = [16, 0], sizes = [8, 32], strides = [1, 1]} : vector<32x32xf32> to vector<8x32xf32>
    %cst_34 = arith.constant dense<0.000000e+00> : vector<16x32xf32>
    %77 = tpu.matmul %75, %76, %cst_34 {dimension_numbers = #tpu.dot_dimension_numbers<[1], [0], [0], [1], [0, 0, 1, 1], [], []>} : vector<16x8xf32>, vector<8x32xf32>, vector<16x32xf32> -> vector<16x32xf32>
    %78 = arith.addf %59, %77 : vector<16x32xf32>
    %79 = vector.extract_strided_slice %17 {offsets = [0, 0, 24], sizes = [2, 8, 8], strides = [1, 1, 1]} : vector<2x8x32xf32> to vector<2x8x8xf32>
    %80 = vector.extract_strided_slice %18 {offsets = [0, 0, 24], sizes = [2, 8, 8], strides = [1, 1, 1]} : vector<2x8x32xf32> to vector<2x8x8xf32>
    %81 = vector.extract_strided_slice %19 {offsets = [0, 0, 24], sizes = [2, 8, 8], strides = [1, 1, 1]} : vector<2x8x32xf32> to vector<2x8x8xf32>
    "tpu.trace_start"() <{level = 10 : i32, message = "bld,bmd->blm"}> : () -> ()
    %cst_35 = arith.constant dense<0.000000e+00> : vector<2x8x8xf32>
    %82 = tpu.matmul %79, %80, %cst_35 {dimension_numbers = #tpu.dot_dimension_numbers<[2], [2], [1], [1], [0, 0, 0, 1, 1, 1], [0], [0]>} : vector<2x8x8xf32>, vector<2x8x8xf32>, vector<2x8x8xf32> -> vector<2x8x8xf32>
    "tpu.trace_stop"() : () -> ()
    %cst_36 = arith.constant dense<0xFF800000> : vector<2x8xf32>
    %83 = vector.multi_reduction <maximumf>, %82, %cst_36 [2] : vector<2x8x8xf32> to vector<2x8xf32>
    %84 = vector.shape_cast %83 : vector<2x8xf32> to vector<2x8x1xf32>
    %85 = vector.broadcast %84 : vector<2x8x1xf32> to vector<2x8x8xf32>
    %86 = arith.subf %82, %85 : vector<2x8x8xf32>
    %87 = math.exp %86 : vector<2x8x8xf32>
    %cst_37 = arith.constant dense<0.000000e+00> : vector<2x8xf32>
    %88 = vector.multi_reduction <add>, %87, %cst_37 [2] : vector<2x8x8xf32> to vector<2x8xf32>
    %89 = vector.shape_cast %88 : vector<2x8xf32> to vector<2x8x1xf32>
    %90 = tpu.reciprocal %89 {approx = true} : vector<2x8x1xf32> -> vector<2x8x1xf32>
    %91 = vector.broadcast %90 : vector<2x8x1xf32> to vector<2x8x8xf32>
    %92 = arith.mulf %87, %91 : vector<2x8x8xf32>
    "tpu.trace_start"() <{level = 10 : i32, message = "blm,bmd->bld"}> : () -> ()
    %cst_38 = arith.constant dense<0.000000e+00> : vector<2x8x8xf32>
    %93 = tpu.matmul %92, %81, %cst_38 {dimension_numbers = #tpu.dot_dimension_numbers<[2], [1], [1], [2], [0, 0, 0, 1, 1, 2], [0], [0]>} : vector<2x8x8xf32>, vector<2x8x8xf32>, vector<2x8x8xf32> -> vector<2x8x8xf32>
    "tpu.trace_stop"() : () -> ()
    %94 = vector.shape_cast %93 : vector<2x8x8xf32> to vector<16x8xf32>
    %95 = vector.extract_strided_slice %20 {offsets = [24, 0], sizes = [8, 32], strides = [1, 1]} : vector<32x32xf32> to vector<8x32xf32>
    %cst_39 = arith.constant dense<0.000000e+00> : vector<16x32xf32>
    %96 = tpu.matmul %94, %95, %cst_39 {dimension_numbers = #tpu.dot_dimension_numbers<[1], [0], [0], [1], [0, 0, 1, 1], [], []>} : vector<16x8xf32>, vector<8x32xf32>, vector<16x32xf32> -> vector<16x32xf32>
    %97 = arith.addf %78, %96 : vector<16x32xf32>
    %c0_40 = arith.constant 0 : index
    %c0_41 = arith.constant 0 : index
    %98 = vector.load %arg10[%c0_40, %c0_41] : memref<1x32xf32, #tpu.memory_space<vmem>>, vector<1x32xf32>
    %99 = vector.broadcast %98 : vector<1x32xf32> to vector<16x32xf32>
    %100 = arith.addf %97, %99 : vector<16x32xf32>
    %c0_42 = arith.constant 0 : index
    %c0_43 = arith.constant 0 : index
    %101 = vector.load %arg11[%c0_42, %c0_43] : memref<16x32xf32, #tpu.memory_space<vmem>>, vector<16x32xf32>
    tpu.vector_store %arg11[%c0_42, %c0_43], %100 {strides = array<i32>} : memref<16x32xf32, #tpu.memory_space<vmem>>, vector<16x32xf32>,
    return
  }
  func.func @transform_0(%arg0: i32) -> (i32, i32) {
    %c0_i32 = arith.constant 0 : i32
    %c0_i32_0 = arith.constant 0 : i32
    return %arg0, %c0_i32 : i32, i32
  }
  func.func @transform_1(%arg0: i32) -> (i32, i32) {
    %c0_i32 = arith.constant 0 : i32
    %c0_i32_0 = arith.constant 0 : i32
    return %arg0, %c0_i32 : i32, i32
  }
  func.func @transform_2(%arg0: i32) -> (i32, i32) {
    %c0_i32 = arith.constant 0 : i32
    %c0_i32_0 = arith.constant 0 : i32
    %c0_i32_1 = arith.constant 0 : i32
    return %c0_i32, %c0_i32_0 : i32, i32
  }
  func.func @transform_3(%arg0: i32) -> (i32, i32) {
    %c0_i32 = arith.constant 0 : i32
    %c0_i32_0 = arith.constant 0 : i32
    %c0_i32_1 = arith.constant 0 : i32
    return %c0_i32, %c0_i32_0 : i32, i32
  }
  func.func @transform_4(%arg0: i32) -> (i32, i32) {
    %c0_i32 = arith.constant 0 : i32
    %c0_i32_0 = arith.constant 0 : i32
    %c0_i32_1 = arith.constant 0 : i32
    return %c0_i32, %c0_i32_0 : i32, i32
  }
  func.func @transform_5(%arg0: i32) -> (i32, i32) {
    %c0_i32 = arith.constant 0 : i32
    %c0_i32_0 = arith.constant 0 : i32
    %c0_i32_1 = arith.constant 0 : i32
    return %c0_i32, %c0_i32_0 : i32, i32
  }
  func.func @transform_6(%arg0: i32) -> (i32, i32) {
    %c0_i32 = arith.constant 0 : i32
    %c0_i32_0 = arith.constant 0 : i32
    %c0_i32_1 = arith.constant 0 : i32
    return %c0_i32, %c0_i32_0 : i32, i32
  }
  func.func @transform_7(%arg0: i32) -> (i32, i32) {
    %c0_i32 = arith.constant 0 : i32
    %c0_i32_0 = arith.constant 0 : i32
    %c0_i32_1 = arith.constant 0 : i32
    return %c0_i32, %c0_i32_0 : i32, i32
  }
  func.func @transform_8(%arg0: i32) -> (i32, i32) {
    %c0_i32 = arith.constant 0 : i32
    %c0_i32_0 = arith.constant 0 : i32
    %c0_i32_1 = arith.constant 0 : i32
    return %c0_i32, %c0_i32_0 : i32, i32
  }
  func.func @transform_9(%arg0: i32) -> (i32, i32) {
    %c0_i32 = arith.constant 0 : i32
    %c0_i32_0 = arith.constant 0 : i32
    %c0_i32_1 = arith.constant 0 : i32
    return %c0_i32, %c0_i32_0 : i32, i32
  }
  func.func @transform_10(%arg0: i32) -> (i32, i32) {
    %c0_i32 = arith.constant 0 : i32
    %c0_i32_0 = arith.constant 0 : i32
    return %arg0, %c0_i32 : i32, i32
  }
}

</mosaic_0001>

<bundles_post_ra>
// kernel: tpu_custom_call.1
= control target key start
LH: loop header
LB: loop body
LE: loop exit
PB: predicated region body
PF: predicated region fallthrough
CT: control target
= control target key end

     0   :  { %15 = vsyncpa [#allocation3], 0  ;;  %s2917_s0 = inlined_call_operand.hbm [shape: f32[16,32], index: 0, kind: input, shape index: {}]   ;;  %s2918_s1 = inlined_call_operand.hbm [shape: f32[16,32], index: 1, kind: input, shape index: {}]   ;;  %s2919_s2 = inlined_call_operand.hbm [shape: f32[32,32], index: 2, kind: input, shape index: {}]   ;;  %s2920_s3 = inlined_call_operand.vmem [shape: f32[1,32], index: 3, kind: input, shape index: {}]   ;;  %s2921_s4 = inlined_call_operand.hbm [shape: f32[32,32], index: 4, kind: input, shape index: {}]   ;;  %s2922_s5 = inlined_call_operand.vmem [shape: f32[1,32], index: 5, kind: input, shape index: {}]   ;;  %s2923_s6 = inlined_call_operand.hbm [shape: f32[32,32], index: 6, kind: input, shape index: {}]   ;;  %s2924_s7 = inlined_call_operand.vmem [shape: f32[1,32], index: 7, kind: input, shape index: {}]   ;;  %s2925_s8 = inlined_call_operand.hbm [shape: f32[32,32], index: 8, kind: input, shape index: {}]   ;;  %s2926_s9 = inlined_call_operand.vmem [shape: f32[1,32], index: 9, kind: input, shape index: {}]   ;;  %s2927_s10 = inlined_call_operand.hbm [shape: f32[16,32], index: 10, kind: output, shape index: {}]  }
   0x1   :  { %16 = vsyncpa [#allocation6], 0 }
   0x2   :  { %17 = vsyncpa [#allocation9], 0 }
   0x3   :  { %18 = vsyncpa [#allocation12], 0 }
   0x4   :  { %19 = vsyncpa [#allocation4], 0  ;;  %s2546_s13 = smov [#allocation5]   ;;  %s2547_s15 = smov [#allocation8]  }
   0x5   :  { %s37_s14 = sshll.u32 %s2546_s13, 4  ;;  %s63_s16 = sshll.u32 %s2547_s15, 4  ;;  %s38_s14 = int_to_ptr.vmem [resolvable:$true] %s37_s14  ;;  %s2615_s16 = int_to_ptr.vmem [resolvable:$true] %s63_s16 }
   0x6   :  { %s2382_s19 = scalar_lea.hbm %s2918_s1, 256 }
   0x7   :  { %p2383_p0 = scmp.ne.s32.totalorder %s2918_s1, %s2382_s19  ;;  %p2386_p1 = scmp.lt.u32.totalorder %s2382_s19, %s2918_s1 }
   0x9   :  { %p2388_p2 = pnand %p2386_p1, %p2383_p0 }
   0xb   :  { %2391 = shalt.err (!%p2388_p2)
}
   0xc   :  { %s2392_s24 = scalar_lea.vmem %s38_s14, 256  ;;  %p2397_p4 = scmp.lt.s32.totalorder %s38_s14, %s38_s14 }
   0xd   :  { %p2393_p3 = scmp.ne.s32.totalorder %s38_s14, %s2392_s24  ;;  %p2398_p5 = scmp.lt.s32.totalorder %s2392_s24, %s2392_s24 }
   0xf   :  { %p2399_p6 = por %p2398_p5, %p2397_p4 }
  0x11   :  { %p2400_p7 = pnand %p2399_p6, %p2393_p3 }
  0x13   :  { %2403 = shalt.err (!%p2400_p7)
}
  0x14   :  { %s2548_s25 = smov 128   ;;  %s2549_s26 = smov 8  }
  0x15   :  { %43 = dma.hbm_to_vmem [thread:$0]  %s2918_s1, 256, %s38_s14, [#allocation6], %s2548_s25, %s2548_s25, %s2549_s26  }
  0x16   :  { %s2404_s11 = scalar_lea.hbm %s2921_s4, 512 }
  0x17   :  { %p2405_p8 = scmp.ne.s32.totalorder %s2921_s4, %s2404_s11  ;;  %p2408_p9 = scmp.lt.u32.totalorder %s2404_s11, %s2921_s4 }
  0x19   :  { %p2410_p10 = pnand %p2408_p9, %p2405_p8 }
  0x1b   :  { %2413 = shalt.err (!%p2410_p10)
}
  0x1c   :  { %s2414_s18 = scalar_lea.vmem %s2615_s16, 512  ;;  %p2419_p12 = scmp.lt.s32.totalorder %s2615_s16, %s2615_s16 }
  0x1d   :  { %p2415_p11 = scmp.ne.s32.totalorder %s2615_s16, %s2414_s18  ;;  %p2420_p13 = scmp.lt.s32.totalorder %s2414_s18, %s2414_s18 }
  0x1f   :  { %p2421_p0 = por %p2420_p13, %p2419_p12 }
  0x21   :  { %p2422_p1 = pnand %p2421_p0, %p2415_p11 }
  0x23   :  { %2425 = shalt.err (!%p2422_p1)
}
  0x24   :  { %69 = dma.hbm_to_vmem [thread:$0]  %s2921_s4, 512, %s2615_s16, [#allocation9], %s2548_s25, %s2548_s25, %s2549_s26  }
  0x25   :  { %s2550_s19 = smov [#allocation2]   ;;  %s2551_s21 = smov [#allocation7]  }
  0x26   :  { %s25_s20 = sshll.u32 %s2550_s19, 4  ;;  %s49_s22 = sshll.u32 %s2551_s21, 4  ;;  %s26_s20 = int_to_ptr.vmem [resolvable:$true] %s25_s20  ;;  %s2652_s22 = int_to_ptr.vmem [resolvable:$true] %s49_s22 }
  0x27   :  { %s2426_s27 = scalar_lea.hbm %s2917_s0, 256 }
  0x28   :  { %p2427_p2 = scmp.ne.s32.totalorder %s2917_s0, %s2426_s27  ;;  %p2430_p3 = scmp.lt.u32.totalorder %s2426_s27, %s2917_s0 }
  0x2a   :  { %p2432_p4 = pnand %p2430_p3, %p2427_p2 }
  0x2c   :  { %2435 = shalt.err (!%p2432_p4)
}
  0x2d   :  { %s2436_s4 = scalar_lea.vmem %s26_s20, 256  ;;  %p2441_p6 = scmp.lt.s32.totalorder %s26_s20, %s26_s20 }
  0x2e   :  { %p2437_p5 = scmp.ne.s32.totalorder %s26_s20, %s2436_s4  ;;  %p2442_p7 = scmp.lt.s32.totalorder %s2436_s4, %s2436_s4 }
  0x30   :  { %p2443_p8 = por %p2442_p7, %p2441_p6 }
  0x32   :  { %p2444_p9 = pnand %p2443_p8, %p2437_p5 }
  0x34   :  { %2447 = shalt.err (!%p2444_p9)
}
  0x35   :  { %31 = dma.hbm_to_vmem [thread:$0]  %s2917_s0, 256, %s26_s20, [#allocation3], %s2548_s25, %s2548_s25, %s2549_s26  }
  0x36   :  { %s2448_s17 = scalar_lea.hbm %s2919_s2, 512 }
  0x37   :  { %p2449_p10 = scmp.ne.s32.totalorder %s2919_s2, %s2448_s17  ;;  %p2452_p11 = scmp.lt.u32.totalorder %s2448_s17, %s2919_s2 }
  0x39   :  { %p2454_p12 = pnand %p2452_p11, %p2449_p10 }
  0x3b   :  { %2457 = shalt.err (!%p2454_p12)
}
  0x3c   :  { %s2458_s21 = scalar_lea.vmem %s2652_s22, 512  ;;  %p2463_p0 = scmp.lt.s32.totalorder %s2652_s22, %s2652_s22 }
  0x3d   :  { %p2459_p13 = scmp.ne.s32.totalorder %s2652_s22, %s2458_s21  ;;  %p2464_p1 = scmp.lt.s32.totalorder %s2458_s21, %s2458_s21 }
  0x3f   :  { %p2465_p2 = por %p2464_p1, %p2463_p0 }
  0x41   :  { %p2466_p3 = pnand %p2465_p2, %p2459_p13 }
  0x43   :  { %2469 = shalt.err (!%p2466_p3)
}
  0x44   :  { %55 = dma.hbm_to_vmem [thread:$0]  %s2919_s2, 512, %s2652_s22, [#allocation6], %s2548_s25, %s2548_s25, %s2549_s26  }
  0x45   :  { %s2552_s23 = smov [#allocation10]   ;;  %s2553_s27 = smov [#allocation11]  }
  0x46   :  { %s77_s24 = sshll.u32 %s2552_s23, 4  ;;  %s91_s28 = sshll.u32 %s2553_s27, 4  ;;  %s78_s24 = int_to_ptr.vmem [resolvable:$true] %s77_s24  ;;  %s2689_s28 = int_to_ptr.vmem [resolvable:$true] %s91_s28 }
  0x47   :  { %s2470_s11 = scalar_lea.hbm %s2923_s6, 512 }
  0x48   :  { %p2471_p4 = scmp.ne.s32.totalorder %s2923_s6, %s2470_s11  ;;  %p2474_p5 = scmp.lt.u32.totalorder %s2470_s11, %s2923_s6 }
  0x4a   :  { %p2476_p6 = pnand %p2474_p5, %p2471_p4 }
  0x4c   :  { %2479 = shalt.err (!%p2476_p6)
}
  0x4d   :  { %s2480_s2 = scalar_lea.vmem %s78_s24, 512  ;;  %p2485_p8 = scmp.lt.s32.totalorder %s78_s24, %s78_s24 }
  0x4e   :  { %p2481_p7 = scmp.ne.s32.totalorder %s78_s24, %s2480_s2  ;;  %p2486_p9 = scmp.lt.s32.totalorder %s2480_s2, %s2480_s2 }
  0x50   :  { %p2487_p10 = por %p2486_p9, %p2485_p8 }
  0x52   :  { %p2488_p11 = pnand %p2487_p10, %p2481_p7 }
  0x54   :  { %2491 = shalt.err (!%p2488_p11)
}
  0x55   :  { %83 = dma.hbm_to_vmem [thread:$0]  %s2923_s6, 512, %s78_s24, [#allocation9], %s2548_s25, %s2548_s25, %s2549_s26  }
  0x56   :  { %s2492_s1 = scalar_lea.hbm %s2925_s8, 512 }
  0x57   :  { %p2493_p12 = scmp.ne.s32.totalorder %s2925_s8, %s2492_s1  ;;  %p2496_p13 = scmp.lt.u32.totalorder %s2492_s1, %s2925_s8 }
  0x59   :  { %p2498_p0 = pnand %p2496_p13, %p2493_p12 }
  0x5b   :  { %2501 = shalt.err (!%p2498_p0)
}
  0x5c   :  { %s2502_s20 = scalar_lea.vmem %s2689_s28, 512  ;;  %p2507_p2 = scmp.lt.s32.totalorder %s2689_s28, %s2689_s28 }
  0x5d   :  { %p2503_p1 = scmp.ne.s32.totalorder %s2689_s28, %s2502_s20  ;;  %p2508_p3 = scmp.lt.s32.totalorder %s2502_s20, %s2502_s20 }
  0x5f   :  { %p2509_p4 = por %p2508_p3, %p2507_p2 }
  0x61   :  { %p2510_p5 = pnand %p2509_p4, %p2503_p1 }
  0x63   :  { %2513 = shalt.err (!%p2510_p5)
}
  0x64   :  { %97 = dma.hbm_to_vmem [thread:$0]  %s2925_s8, 512, %s2689_s28, [#allocation12], %s2548_s25, %s2548_s25, %s2549_s26  }
  0x65   :  { %2536 = dma.done.wait [#allocation3], 256  }
  0x66   :  { %2537 = vsyncadd [#allocation3], 4294967040 }
  0x67   :  { %2538 = dma.done.wait [#allocation6], 768  }
  0x68   :  { %2539 = vsyncadd [#allocation6], 4294966528 }
  0x69   :  { %2540 = dma.done.wait [#allocation9], 1024  }
  0x6a   :  { %2541 = vsyncadd [#allocation9], 4294966272 }
  0x6b   :  { %2542 = dma.done.wait [#allocation12], 512  }
  0x6c   :  { %2543 = vsyncadd [#allocation12], 4294966784  ;;  %v215_v0 = vld [vmem:[#allocation8] sm:$0xff]  ;;  %v216_v1 = vld [vmem:[#allocation8 + $0x8] sm:$0xff]  ;;  %vm133_vm0 = vcmask 261120   ;;  %v2554_v14 = vmov 0.0  }
  0x6d   :  { %v122_v2 = vld [vmem:[#allocation7] sm:$0xff]  ;;  %v2314_v3 = vpack.c.bf16 %v216_v1, %v215_v0  ;;  %v123_v4 = vld [vmem:[#allocation7 + $0x8] sm:$0xff]  ;;  %v217_v5 = vld [vmem:[#allocation8 + $0x10] sm:$0xff]  ;;  %vm2555_vm1 = vmmov 0   ;;  %vm397_vm2 = vcmask 64512   ;;  %s2557_s30 = smov 112  }
  0x6e   :  { %v218_v6 = vld [vmem:[#allocation8 + $0x18] sm:$0xff]  ;;  %v2306_v7 = vpack.c.bf16 %v123_v4, %v122_v2  ;;  %v124_v9 = vld [vmem:[#allocation7 + $0x10] sm:$0xff]  ;;  %v118_v11 = vld [vmem:[#allocation2] sm:$0xff]  ;;  %s2559_s16 = smov [#allocation13]  }
  0x6f   :  { %v2318_v8 = vpack.c.bf16 %v218_v6, %v217_v5  ;;  %v125_v10 = vld [vmem:[#allocation7 + $0x18] sm:$0xff]  ;;  %2315 = vmatprep.subr.bf16.mxu1 %v2314_v3  ;;  %2192 = vmatprep.mubr.msk.f32.mxu1 %vm133_vm0, %v118_v11  ;;  %v119_v13 = vld [vmem:[#allocation2 + $0x8] sm:$0xff]  ;;  %v2072_v15 = vld [vmem:[%s2922_s5] ss:$0 sm:$0xff]  ;;  %s2054_s12 = sshll.u32 %s2559_s16, 4  ;;  %s2055_s12 = int_to_ptr.vmem [resolvable:$true] %s2054_s12 }
  0x70   :  { %v2310_v12 = vpack.c.bf16 %v125_v10, %v124_v9  ;;  %2317 = vmatpush3.bf16.msra.mxu1 %v2314_v3  ;;  %2307 = vmatprep.subr.bf16.mxu0 %v2306_v7  ;;  %v2069_v17 = vld [vmem:[%s2920_s3] ss:$0 sm:$0xff]  ;;  %v302_v26 = vld [vmem:[#allocation10 + $0x8] sm:$0xff]  ;;  %v303_v27 = vld [vmem:[#allocation10 + $0x10] sm:$0xff]  ;;  %s2556_s3 = smov 120   ;;  %s2514_s13 = scalar_lea.vmem %s2055_s12, 256 }
  0x71   :  { %2309 = vmatpush3.bf16.msra.mxu0 %v2306_v7  ;;  %2319 = vmatprep.subr.bf16.mxu1 %v2318_v8  ;;  %v301_v25 = vld [vmem:[#allocation10] sm:$0xff]  ;;  %v304_v29 = vld [vmem:[#allocation10 + $0x18] sm:$0xff]  ;;  %v120_v30 = vld [vmem:[#allocation5] sm:$0xff]  ;;  %p2515_p6 = scmp.ne.s32.totalorder %s2055_s12, %s2514_s13  ;;  %p2519_p7 = scmp.lt.s32.totalorder %s2055_s12, %s2055_s12 }
  0x72   :  { %2311 = vmatprep.subr.bf16.mxu0 %v2310_v12  ;;  %2181 = vmatprep.mubr.msk.f32.mxu0 %vm133_vm0, %v118_v11  ;;  %v2322_v28 = vpack.c.bf16 %v302_v26, %v301_v25  ;;  %v2326_v31 = vpack.c.bf16 %v304_v29, %v303_v27  ;;  %v121_v32 = vld [vmem:[#allocation5 + $0x8] sm:$0xff]  ;;  %v2075_v50 = vld [vmem:[%s2924_s7] ss:$0 sm:$0xff]  ;;  %s2558_s7 = smov 104   ;;  %p2520_p8 = scmp.lt.s32.totalorder %s2514_s13, %s2514_s13 }
  0x74   :  { %2321 = vmatpush3.bf16.msra.mxu1 %v2318_v8  ;;  %p2521_p9 = por %p2520_p8, %p2519_p7 }
  0x75   :  { %2313 = vmatpush3.bf16.msra.mxu0 %v2310_v12  ;;  %2206 = vmatprep.subr.mxu1 %v2554_v14 }
  0x76   :  { %2323 = vmatprep.subr.bf16.mxu0 %v2322_v28  ;;  %p2522_p10 = pnand %p2521_p9, %p2515_p6 }
  0x77   :  { %2193 = vmatmul.mubr.msk.f32.vlgmr.msra.gmra.mrb[0].mxu1 %vm133_vm0, %v119_v13 }
  0x78   :  { %2182 = vmatmul.mubr.msk.f32.vlgmr.msra.gmra.mrb[0].mxu0 %vm133_vm0, %v119_v13  ;;  %2208 = vmatprep.mubr.msk.f32.mxu1 %vm2555_vm1, %v2554_v14 }
  0x79   :  { %2203 = vmatprep.mubr.msk.f32.mxu0 %vm133_vm0, %v120_v30  ;;  %2325 = vmatpush3.bf16.msra.mxu0 %v2322_v28 }
  0x7a   :  { %2327 = vmatprep.subr.bf16.mxu0 %v2326_v31 }
  0x7d   :  { %2329 = vmatpush3.bf16.msra.mxu0 %v2326_v31 }
  0x7e   :  { %2226 = vmatprep.subr.mxu0 %v2554_v14 }
  0x80   :  { %2204 = vmatmul.mubr.msk.f32.vlgmr.msra.gmra.mrb[2].mxu0 %vm133_vm0, %v121_v32 }
  0x81   :  { %2228 = vmatprep.mubr.msk.f32.mxu0 %vm2555_vm1, %v2554_v14 }
 0x14a   :  { %v2194_v16 = vpop.f32.mrb[0].mxu1 }
 0x14b   :  { %v292_v18 = vpop.f32.mrb[1].mxu1  ;;  %v2183_v19 = vpop.f32.mrb[0].mxu0  ;;  %v2746_v23 = vadd.f32 %v2194_v16, %v2072_v15 }
 0x14c   :  { %v2739_v20 = vadd.f32 %v2072_v15, %v292_v18  ;;  %v206_v21 = vpop.f32.mrb[1].mxu0  ;;  %v2754_v24 = vadd.f32 %v2183_v19, %v2069_v17 }
 0x14d   :  { %v2741_v22 = vadd.f32 %v2069_v17, %v206_v21 }
 0x14e   :  { %2207 = vmatpush3.xpose.msk.msra.mxu1 %vm397_vm2, %v2739_v20 }
 0x14f   :  { %2211 = vmatprep.subr.mxu1 %v2554_v14 }
 0x151   :  { %2209 = vmatmul.mubr.msk.f32.vlgmr.msra.gmra.mrb[2].mxu1 %vm397_vm2, %v2741_v22 }
 0x152   :  { %2212 = vmatpush3.xpose.msk.msra.mxu1 %vm397_vm2, %v2746_v23  ;;  %2213 = vmatprep.mubr.msk.f32.mxu1 %vm2555_vm1, %v2554_v14 }
 0x153   :  { %2216 = vmatprep.subr.mxu1 %v2554_v14  ;;  %v2205_v49 = vpop.f32.mrb[2].mxu0 }
 0x154   :  { %v384_v51 = vpop.f32.mrb[3].mxu0  ;;  %v2777_v52 = vadd.f32 %v2205_v49, %v2075_v50 }
 0x155   :  { %2214 = vmatmul.mubr.msk.f32.vlgmr.msra.gmra.mrb[4].mxu1 %vm397_vm2, %v2754_v24  ;;  %v2779_v53 = vadd.f32 %v2075_v50, %v384_v51 }
 0x156   :  { %2218 = vmatprep.mubr.msk.f32.mxu1 %vm2555_vm1, %v2554_v14 }
 0x157   :  { %2217 = vmatpush3.msra.mxu1 %v2779_v53 }
 0x158   :  { %2221 = vmatprep.subr.mxu1 %v2554_v14 }
 0x224   :  { %v470_v33 = vpop.f32.mrb[2].mxu1 }
 0x225   :  { %v2210_v34 = vpop.f32.mrb[3].mxu1  ;;  %v550_v35 = vsel %vm397_vm2, %v470_v33, -inf }
 0x226   :  { %551 = vmax.xlane.f32.xlu0 %v550_v35 }
 0x228   :  { %v546_v36 = vpop.f32.mrb[4].mxu1 }
 0x229   :  { %v2215_v37 = vpop.f32.mrb[5].mxu1  ;;  %v553_v38 = vsel %vm397_vm2, %v546_v36, -inf }
 0x22a   :  { %554 = vmax.xlane.f32.xlu0 %v553_v38 }
 0x240   :  { %798 = vrot.lane.b32.xlu0 %v2746_v23, %s2556_s3 }
 0x2b3   :  { %v552_v39 = vpop.xlane.xlu0 %551 }
 0x2b4   :  { %v556_v40 = vsub.f32 %v470_v33, %v552_v39 }
 0x2b6   :  { %v558_v41 = vmul.f32 1.442695, %v556_v40 }
 0x2b7   :  { %v555_v42 = vpop.xlane.xlu0 %554 }
 0x2b8   :  { %2350 = vpow2.f32 %v558_v41  ;;  %v557_v43 = vsub.f32 %v546_v36, %v555_v42 }
 0x2ba   :  { %v560_v44 = vmul.f32 1.442695, %v557_v43  ;;  %v394_v43 = vld [vmem:[#allocation11 + $0x8] sm:$0xff] }
 0x2bb   :  { %v799_v63 = vpop.permute.xlu0 %798 }
 0x2bc   :  { %2352 = vpow2.f32 %v560_v44  ;;  %v393_v44 = vld [vmem:[#allocation11] sm:$0xff] }
 0x2c2   :  { %v2351_v45 = vpop.eup %2350 }
 0x2c3   :  { %v562_v46 = vsel %vm397_vm2, %v2351_v45, 0.0 }
 0x2c4   :  { %563 = vadd.xlane.f32.xlu1 %v562_v46 }
 0x2c6   :  { %v2353_v47 = vpop.eup %2352 }
 0x2c7   :  { %v565_v48 = vsel %vm397_vm2, %v2353_v47, 0.0 }
 0x2c8   :  { %566 = vadd.xlane.f32.xlu1 %v565_v48 }
 0x2d9   :  { %796 = vrot.lane.b32.xlu1 %v2754_v24, %s2556_s3 }
 0x2dd   :  { %720 = vrot.lane.b32.xlu1 %v2739_v20, %s2556_s3 }
 0x2e1   :  { %718 = vrot.lane.b32.xlu1 %v2741_v22, %s2556_s3 }
 0x2e5   :  { %1214 = vrot.lane.b32.xlu1 %v2739_v20, %s2557_s30 }
 0x351   :  { %v564_v54 = vpop.xlane.xlu1 %563 }
 0x352   :  { %2354 = vrcp.f32 %v564_v54 }
 0x355   :  { %v567_v55 = vpop.xlane.xlu1 %566 }
 0x356   :  { %2356 = vrcp.f32 %v567_v55 }
 0x359   :  { %v797_v56 = vpop.permute.xlu1 %796 }
 0x35c   :  { %v2355_v57 = vpop.eup %2354 }
 0x35d   :  { %v570_v58 = vmul.f32 %v2355_v57, %v2351_v45  ;;  %v721_v59 = vpop.permute.xlu1 %720 }
 0x35e   :  { %2227 = vmatpush3.xpose.msk.msra.mxu0 %vm397_vm2, %v721_v59 }
 0x35f   :  { %2219 = vmatmul.mubr.msk.f32.vlgmr.msra.gmra.mrb[6].mxu1 %vm397_vm2, %v570_v58  ;;  %2236 = vmatprep.subr.mxu0 %v2554_v14 }
 0x360   :  { %v2357_v60 = vpop.eup %2356  ;;  %2222 = vmatpush3.msra.mxu1 %v2777_v52  ;;  %2223 = vmatprep.mubr.msk.f32.mxu1 %vm2555_vm1, %v2554_v14 }
 0x361   :  { %v571_v61 = vmul.f32 %v2357_v60, %v2353_v47  ;;  %v719_v62 = vpop.permute.xlu1 %718  ;;  %2231 = vmatprep.subr.mxu1 %v2554_v14  ;;  %v395_v60 = vld [vmem:[#allocation11 + $0x10] sm:$0xff] }
 0x362   :  { %2229 = vmatmul.mubr.msk.f32.vlgmr.msra.gmra.mrb[4].mxu0 %vm397_vm2, %v719_v62 }
 0x363   :  { %2224 = vmatmul.mubr.msk.f32.vlgmr.msra.gmra.mrb[8].mxu1 %vm397_vm2, %v571_v61  ;;  %2238 = vmatprep.mubr.msk.f32.mxu0 %vm2555_vm1, %v2554_v14 }
 0x364   :  { %2233 = vmatprep.mubr.msk.f32.mxu1 %vm2555_vm1, %v2554_v14 }
 0x365   :  { %v1215_v17 = vpop.permute.xlu1 %1214 }
 0x367   :  { %2232 = vmatpush3.xpose.msk.msra.mxu1 %vm397_vm2, %v799_v63 }
 0x368   :  { %2241 = vmatprep.subr.mxu1 %v2554_v14 }
 0x36a   :  { %2234 = vmatmul.mubr.msk.f32.vlgmr.msra.gmra.mrb[10].mxu1 %vm397_vm2, %v797_v56 }
 0x36b   :  { %2243 = vmatprep.mubr.msk.f32.mxu1 %vm2555_vm1, %v2554_v14 }
 0x432   :  { %v2807_v0 = vpop.f32.mrb[6].mxu1 }
 0x433   :  { %v2220_v1 = vpop.f32.mrb[7].mxu1 }
 0x435   :  { %v792_v2 = vpop.f32.mrb[4].mxu0 }
 0x436   :  { %v2809_v3 = vpop.f32.mrb[8].mxu1  ;;  %v2230_v4 = vpop.f32.mrb[5].mxu0  ;;  %v874_v16 = vsel %vm397_vm2, %v792_v2, -inf }
 0x437   :  { %v2225_v5 = vpop.f32.mrb[9].mxu1 }
 0x43d   :  { %v870_v6 = vpop.f32.mrb[10].mxu1 }
 0x43e   :  { %v2235_v7 = vpop.f32.mrb[11].mxu1  ;;  %v877_v8 = vsel %vm397_vm2, %v870_v6, -inf }
 0x43f   :  { %878 = vmax.xlane.f32.xlu0 %v877_v8 }
 0x455   :  { %974 = vrot.lane.b32.xlu0 %v2777_v52, %s2556_s3 }
 0x459   :  { %1212 = vrot.lane.b32.xlu0 %v2741_v22, %s2557_s30 }
 0x45d   :  { %1290 = vrot.lane.b32.xlu0 %v2754_v24, %s2557_s30 }
 0x4cc   :  { %v879_v9 = vpop.xlane.xlu0 %878 }
 0x4cd   :  { %v881_v10 = vsub.f32 %v870_v6, %v879_v9 }
 0x4cf   :  { %v884_v11 = vmul.f32 1.442695, %v881_v10 }
 0x4d0   :  { %v975_v12 = vpop.permute.xlu0 %974 }
 0x4d1   :  { %2358 = vpow2.f32 %v884_v11  ;;  %2242 = vmatpush3.msra.mxu1 %v975_v12 }
 0x4d2   :  { %2256 = vmatprep.subr.mxu1 %v2554_v14 }
 0x4d4   :  { %v1213_v25 = vpop.permute.xlu0 %1212 }
 0x4d8   :  { %v1291_v27 = vpop.permute.xlu0 %1290 }
 0x4db   :  { %v2359_v13 = vpop.eup %2358 }
 0x4dc   :  { %v889_v15 = vsel %vm397_vm2, %v2359_v13, 0.0 }
 0x4dd   :  { %890 = vadd.xlane.f32.xlu1 %v889_v15 }
 0x4ee   :  { %1292 = vrot.lane.b32.xlu1 %v2746_v23, %s2557_s30 }
 0x512   :  { %875 = vmax.xlane.f32.xlu1 %v874_v16 }
 0x56a   :  { %v891_v18 = vpop.xlane.xlu1 %890 }
 0x56b   :  { %2360 = vrcp.f32 %v891_v18 }
 0x56e   :  { %v1293_v26 = vpop.permute.xlu1 %1292 }
 0x575   :  { %v2361_v19 = vpop.eup %2360 }
 0x576   :  { %v895_v21 = vmul.f32 %v2361_v19, %v2359_v13 }
 0x578   :  { %2244 = vmatmul.mubr.msk.f32.vlgmr.msra.gmra.mrb[12].mxu1 %vm397_vm2, %v895_v21 }
 0x579   :  { %2257 = vmatpush3.xpose.msk.msra.mxu1 %vm397_vm2, %v1215_v17  ;;  %2258 = vmatprep.mubr.msk.f32.mxu1 %vm2555_vm1, %v2554_v14 }
 0x57a   :  { %2261 = vmatprep.subr.mxu1 %v2554_v14 }
 0x57c   :  { %2259 = vmatmul.mubr.msk.f32.vlgmr.msra.gmra.mrb[14].mxu1 %vm397_vm2, %v1213_v25 }
 0x57d   :  { %2262 = vmatpush3.xpose.msk.msra.mxu1 %vm397_vm2, %v1293_v26  ;;  %2263 = vmatprep.mubr.msk.f32.mxu1 %vm2555_vm1, %v2554_v14 }
 0x57e   :  { %2271 = vmatprep.subr.mxu1 %v2554_v14 }
 0x580   :  { %2264 = vmatmul.mubr.msk.f32.vlgmr.msra.gmra.mrb[16].mxu1 %vm397_vm2, %v1291_v27 }
 0x581   :  { %2273 = vmatprep.mubr.msk.f32.mxu1 %vm2555_vm1, %v2554_v14 }
 0x59f   :  { %v876_v28 = vpop.xlane.xlu1 %875 }
 0x5a0   :  { %v880_v29 = vsub.f32 %v792_v2, %v876_v28 }
 0x5a2   :  { %v882_v30 = vmul.f32 1.442695, %v880_v29 }
 0x5a4   :  { %2362 = vpow2.f32 %v882_v30 }
 0x5ae   :  { %v2363_v31 = vpop.eup %2362 }
 0x5af   :  { %v886_v32 = vsel %vm397_vm2, %v2363_v31, 0.0 }
 0x5b0   :  { %887 = vadd.xlane.f32.xlu0 %v886_v32 }
 0x5c6   :  { %897 = vrot.lane.b32.xlu0 %v2779_v53, %s2556_s3 }
 0x5ca   :  { %1466 = vrot.lane.b32.xlu0 %v2777_v52, %s2557_s30 }
 0x5ce   :  { %1627 = vrot.lane.b32.xlu0 %v2739_v20, %s2558_s7 }
 0x5d2   :  { %1705 = vrot.lane.b32.xlu0 %v2746_v23, %s2558_s7 }
 0x5d6   :  { %1625 = vrot.lane.b32.xlu0 %v2741_v22, %s2558_s7 }
 0x63d   :  { %v888_v33 = vpop.xlane.xlu0 %887 }
 0x63e   :  { %2364 = vrcp.f32 %v888_v33 }
 0x641   :  { %v898_v34 = vpop.permute.xlu0 %897 }
 0x642   :  { %2237 = vmatpush3.msra.mxu0 %v898_v34 }
 0x643   :  { %2246 = vmatprep.subr.mxu0 %v394_v43 }
 0x645   :  { %v1467_v35 = vpop.permute.xlu0 %1466 }
 0x646   :  { %2272 = vmatpush3.msra.mxu1 %v1467_v35 }
 0x647   :  { %2281 = vmatprep.subr.mxu1 %v2554_v14 }
 0x648   :  { %v2365_v36 = vpop.eup %2364 }
 0x649   :  { %v894_v37 = vmul.f32 %v2365_v36, %v2363_v31  ;;  %v1628_v62 = vpop.permute.xlu0 %1627 }
 0x64b   :  { %2239 = vmatmul.mubr.msk.f32.vlgmr.msra.gmra.mrb[6].mxu0 %vm397_vm2, %v894_v37  ;;  %v1046_v38 = vpop.f32.mrb[12].mxu1  ;;  %v396_v37 = vld [vmem:[#allocation11 + $0x18] sm:$0xff] }
 0x64c   :  { %v2245_v20 = vpop.f32.mrb[13].mxu1  ;;  %2247 = vmatpush3.msra.mxu0 %v394_v43 }
 0x64d   :  { %2251 = vmatprep.subr.mxu0 %v393_v44  ;;  %v1706_v2 = vpop.permute.xlu0 %1705 }
 0x64f   :  { %v1286_v39 = vpop.f32.mrb[14].mxu1 }
 0x650   :  { %v2260_v40 = vpop.f32.mrb[15].mxu1  ;;  %v1368_v23 = vsel %vm397_vm2, %v1286_v39, -inf }
 0x651   :  { %1369 = vmax.xlane.f32.xlu1 %v1368_v23  ;;  %v1626_v4 = vpop.permute.xlu0 %1625  ;;  %v2110_v40 = vld [vmem:[%s2926_s9] ss:$0 sm:$0xff] }
 0x653   :  { %v1364_v22 = vpop.f32.mrb[16].mxu1 }
 0x654   :  { %v2265_v41 = vpop.f32.mrb[17].mxu1  ;;  %v1371_v42 = vsel %vm397_vm2, %v1364_v22, -inf }
 0x655   :  { %1372 = vmax.xlane.f32.xlu1 %v1371_v42 }
 0x6de   :  { %v1370_v45 = vpop.xlane.xlu1 %1369 }
 0x6df   :  { %v1374_v46 = vsub.f32 %v1286_v39, %v1370_v45 }
 0x6e1   :  { %v1376_v47 = vmul.f32 1.442695, %v1374_v46 }
 0x6e2   :  { %v1373_v48 = vpop.xlane.xlu1 %1372 }
 0x6e3   :  { %2366 = vpow2.f32 %v1376_v47  ;;  %v1375_v49 = vsub.f32 %v1364_v22, %v1373_v48 }
 0x6e5   :  { %v1378_v50 = vmul.f32 1.442695, %v1375_v49 }
 0x6e7   :  { %2368 = vpow2.f32 %v1378_v50 }
 0x6ed   :  { %v2367_v51 = vpop.eup %2366 }
 0x6ee   :  { %v1380_v54 = vsel %vm397_vm2, %v2367_v51, 0.0 }
 0x6ef   :  { %1381 = vadd.xlane.f32.xlu1 %v1380_v54 }
 0x6f1   :  { %v2369_v55 = vpop.eup %2368 }
 0x6f2   :  { %v1383_v56 = vsel %vm397_vm2, %v2369_v55, 0.0 }
 0x6f3   :  { %1384 = vadd.xlane.f32.xlu1 %v1383_v56 }
 0x704   :  { %1390 = vrot.lane.b32.xlu1 %v2779_v53, %s2557_s30 }
 0x708   :  { %1703 = vrot.lane.b32.xlu1 %v2754_v24, %s2558_s7 }
 0x71e   :  { %v969_v57 = vpop.f32.mrb[6].mxu0 }
 0x71f   :  { %v2240_v58 = vpop.f32.mrb[7].mxu0  ;;  %2248 = vmatprep.mubr.msk.f32.mxu0 %vm397_vm2, %v969_v57 }
 0x720   :  { %2249 = vmatmul.mubr.msk.f32.vlgmr.msra.gmra.mrb[8].mxu0 %vm397_vm2, %v1046_v38 }
 0x721   :  { %2253 = vmatprep.mubr.msk.f32.mxu0 %vm397_vm2, %v2807_v0  ;;  %2252 = vmatpush3.msra.mxu0 %v393_v44 }
 0x722   :  { %2266 = vmatprep.subr.mxu0 %v2554_v14 }
 0x728   :  { %2254 = vmatmul.mubr.msk.f32.vlgmr.msra.gmra.mrb[8].mxu0 %vm397_vm2, %v2809_v3 }
 0x729   :  { %2268 = vmatprep.mubr.msk.f32.mxu0 %vm2555_vm1, %v2554_v14 }
 0x77c   :  { %v1382_v59 = vpop.xlane.xlu1 %1381 }
 0x77d   :  { %2370 = vrcp.f32 %v1382_v59 }
 0x780   :  { %v1385_v24 = vpop.xlane.xlu1 %1384 }
 0x781   :  { %2372 = vrcp.f32 %v1385_v24 }
 0x784   :  { %v1391_v61 = vpop.permute.xlu1 %1390 }
 0x785   :  { %2267 = vmatpush3.msra.mxu0 %v1391_v61 }
 0x786   :  { %2276 = vmatprep.subr.mxu0 %v395_v60 }
 0x787   :  { %v2371_v63 = vpop.eup %2370 }
 0x788   :  { %v1388_v0 = vmul.f32 %v2371_v63, %v2367_v51  ;;  %v1704_v9 = vpop.permute.xlu1 %1703 }
 0x78a   :  { %2269 = vmatmul.mubr.msk.f32.vlgmr.msra.gmra.mrb[10].mxu0 %vm397_vm2, %v1388_v0 }
 0x78b   :  { %v2373_v1 = vpop.eup %2372  ;;  %2277 = vmatpush3.msra.mxu0 %v395_v60 }
 0x78c   :  { %v1389_v3 = vmul.f32 %v2373_v1, %v2369_v55  ;;  %2286 = vmatprep.subr.mxu0 %v2554_v14 }
 0x78e   :  { %2274 = vmatmul.mubr.msk.f32.vlgmr.msra.gmra.mrb[18].mxu1 %vm397_vm2, %v1389_v3 }
 0x78f   :  { %2282 = vmatpush3.xpose.msk.msra.mxu1 %vm397_vm2, %v1628_v62  ;;  %2283 = vmatprep.mubr.msk.f32.mxu1 %vm2555_vm1, %v2554_v14 }
 0x790   :  { %2291 = vmatprep.subr.mxu1 %v2554_v14 }
 0x792   :  { %2284 = vmatmul.mubr.msk.f32.vlgmr.msra.gmra.mrb[20].mxu1 %vm397_vm2, %v1626_v4 }
 0x793   :  { %2293 = vmatprep.mubr.msk.f32.mxu1 %vm2555_vm1, %v2554_v14 }
 0x85d   :  { %v1462_v5 = vpop.f32.mrb[10].mxu0 }
 0x85e   :  { %v2270_v6 = vpop.f32.mrb[11].mxu0  ;;  %2278 = vmatprep.mubr.msk.f32.mxu0 %vm397_vm2, %v1462_v5 }
 0x861   :  { %v1538_v7 = vpop.f32.mrb[18].mxu1 }
 0x862   :  { %v2275_v8 = vpop.f32.mrb[19].mxu1  ;;  %2279 = vmatmul.mubr.msk.f32.vlgmr.msra.gmra.mrb[8].mxu0 %vm397_vm2, %v1538_v7 }
 0x863   :  { %2287 = vmatpush3.xpose.msk.msra.mxu0 %vm397_vm2, %v1706_v2  ;;  %2288 = vmatprep.mubr.msk.f32.mxu0 %vm2555_vm1, %v2554_v14 }
 0x864   :  { %2296 = vmatprep.subr.mxu0 %v2554_v14 }
 0x865   :  { %v1699_v10 = vpop.f32.mrb[20].mxu1 }
 0x866   :  { %v2285_v11 = vpop.f32.mrb[21].mxu1  ;;  %2289 = vmatmul.mubr.msk.f32.vlgmr.msra.gmra.mrb[12].mxu0 %vm397_vm2, %v1704_v9  ;;  %v1781_v12 = vsel %vm397_vm2, %v1699_v10, -inf }
 0x867   :  { %1782 = vmax.xlane.f32.xlu0 %v1781_v12  ;;  %2298 = vmatprep.mubr.msk.f32.mxu0 %vm2555_vm1, %v2554_v14 }
 0x8f4   :  { %v1783_v13 = vpop.xlane.xlu0 %1782 }
 0x8f5   :  { %v1787_v15 = vsub.f32 %v1699_v10, %v1783_v13 }
 0x8f7   :  { %v1789_v16 = vmul.f32 1.442695, %v1787_v15 }
 0x8f9   :  { %2374 = vpow2.f32 %v1789_v16 }
 0x903   :  { %v2375_v17 = vpop.eup %2374 }
 0x904   :  { %v1793_v18 = vsel %vm397_vm2, %v2375_v17, 0.0 }
 0x905   :  { %1794 = vadd.xlane.f32.xlu0 %v1793_v18 }
 0x939   :  { %v1777_v19 = vpop.f32.mrb[12].mxu0 }
 0x93a   :  { %v2290_v21 = vpop.f32.mrb[13].mxu0  ;;  %v1784_v25 = vsel %vm397_vm2, %v1777_v19, -inf }
 0x93b   :  { %1785 = vmax.xlane.f32.xlu1 %v1784_v25 }
 0x94c   :  { %1879 = vrot.lane.b32.xlu1 %v2777_v52, %s2558_s7 }
 0x992   :  { %v1795_v31 = vpop.xlane.xlu0 %1794 }
 0x9c8   :  { %v1786_v26 = vpop.xlane.xlu1 %1785 }
 0x9c9   :  { %v1788_v27 = vsub.f32 %v1777_v19, %v1786_v26 }
 0x9cb   :  { %v1791_v28 = vmul.f32 1.442695, %v1788_v27 }
 0x9cc   :  { %v1880_v14 = vpop.permute.xlu1 %1879 }
 0x9cd   :  { %2376 = vpow2.f32 %v1791_v28  ;;  %2297 = vmatpush3.msra.mxu0 %v1880_v14 }
 0x9ce   :  { %2378 = vrcp.f32 %v1795_v31  ;;  %2301 = vmatprep.subr.mxu0 %v396_v37 }
 0x9d7   :  { %v2377_v29 = vpop.eup %2376 }
 0x9d8   :  { %v1796_v30 = vsel %vm397_vm2, %v2377_v29, 0.0  ;;  %v2379_v33 = vpop.eup %2378 }
 0x9d9   :  { %1797 = vadd.xlane.f32.xlu0 %v1796_v30  ;;  %v1801_v34 = vmul.f32 %v2379_v33, %v2375_v17 }
 0x9ef   :  { %1803 = vrot.lane.b32.xlu0 %v2779_v53, %s2558_s7 }
 0xa66   :  { %v1798_v32 = vpop.xlane.xlu0 %1797 }
 0xa67   :  { %2380 = vrcp.f32 %v1798_v32 }
 0xa6a   :  { %v1804_v52 = vpop.permute.xlu0 %1803 }
 0xa6b   :  { %2292 = vmatpush3.msra.mxu1 %v1804_v52 }
 0xa6c   :  { %2294 = vmatmul.mubr.msk.f32.vlgmr.msra.gmra.mrb[22].mxu1 %vm397_vm2, %v1801_v34 }
 0xa71   :  { %v2381_v35 = vpop.eup %2380 }
 0xa72   :  { %v1802_v36 = vmul.f32 %v2381_v35, %v2377_v29 }
 0xa74   :  { %2299 = vmatmul.mubr.msk.f32.vlgmr.msra.gmra.mrb[14].mxu0 %vm397_vm2, %v1802_v36 }
 0xa75   :  { %2302 = vmatpush3.msra.mxu0 %v396_v37 }
 0xb3f   :  { %v1875_v38 = vpop.f32.mrb[22].mxu1 }
 0xb40   :  { %v2295_v20 = vpop.f32.mrb[23].mxu1  ;;  %2303 = vmatprep.mubr.msk.f32.mxu0 %vm397_vm2, %v1875_v38 }
 0xb47   :  { %v1951_v53 = vpop.f32.mrb[14].mxu0 }
 0xb48   :  { %v2300_v39 = vpop.f32.mrb[15].mxu0  ;;  %2304 = vmatmul.mubr.msk.f32.vlgmr.msra.gmra.mrb[8].mxu0 %vm397_vm2, %v1951_v53 }
 0xc1b   :  { %v2305_v23 = vpop.f32.mrb[8].mxu0 }
 0xc1c   :  { %v2046_v22 = vadd.f32 %v2305_v23, %v2110_v40  ;;  %v2027_v41 = vpop.f32.mrb[9].mxu0 }
 0xc1d   :  { %v2045_v42 = vadd.f32 %v2110_v40, %v2027_v41 }
 0xc1e   :  { %2048 = vst.msk [vmem:[#allocation13 + $0x8] sm:$0xff] %vm133_vm0, %v2046_v22 }
 0xc1f   :  { %2047 = vst.msk [vmem:[#allocation13] sm:$0xff] %vm133_vm0, %v2045_v42 }
 0xc20   :  { %2525 = shalt.err (!%p2522_p10)
}
 0xc21   :  { %s2526_s22 = scalar_lea.hbm %s2927_s10, 256 }
 0xc22   :  { %p2527_p11 = scmp.ne.s32.totalorder %s2927_s10, %s2526_s22  ;;  %p2530_p12 = scmp.lt.u32.totalorder %s2526_s22, %s2927_s10 }
 0xc24   :  { %p2532_p13 = pnand %p2530_p12, %p2527_p11 }
 0xc26   :  { %2535 = shalt.err (!%p2532_p13)
}
 0xc27   :  { %2060 = dma.vmem_to_hbm [thread:$0]  %s2055_s12, 256, %s2927_s10, [#allocation4], %s2548_s25, %s2548_s25, %s2549_s26  }
 0xc28   :  { %2544 = dma.done.wait [#allocation4], 256  }
 0xc29   :  { %2545 = vsyncadd [#allocation4], 4294967040 }
 0xc2a   :  { %2064 = vsyncpa [#allocation3], 1 }
 0xc2b   :  { %2065 = vsyncpa [#allocation6], 1 }
 0xc2c   :  { %2066 = vsyncpa [#allocation9], 1 }
 0xc2d   :  { %2067 = vsyncpa [#allocation12], 1 }
 0xc2e   :  { %2068 = vsyncpa [#allocation4], 1 }

</bundles_post_ra>
